<compile_context>
chip_gen: v7x
topology: tpu7x:2x2x1
jax: 0.10.0
libtpu: 0.0.40
codegen_flags: <defaults>
</compile_context>

<pallas_src>
import jax
import jax.numpy as jnp
from jax.experimental import pallas as pl
from jax.experimental.pallas import tpu as pltpu

_LANE = 128
_MAX_DMA_CHUNKS = 8            # DMAs kept in flight for one copy
_MIN_CHUNK_BYTES = 1 << 20     # don't split below ~1 MiB per DMA


def identity(x: jnp.ndarray) -> jnp.ndarray:
    """The real Identity forward: zero bytes moved, zero kernels launched."""
    return x


def _chunk_bounds(total: int, num_chunks: int, align: int):
    """Static (start, size) chunks covering [0, total); starts aligned to `align`."""
    num_chunks = max(1, min(num_chunks, -(-total // align)))
    per = -(-total // num_chunks)          # ceil divide
    per = -(-per // align) * align         # round chunk size up to alignment
    bounds = []
    start = 0
    while start < total:
        size = min(per, total - start)     # last chunk clamped, never over-reads
        bounds.append((start, size))
        start += size
    return bounds


def _make_dma_copy_kernel(bounds):
    """HBM->HBM copy: issue every chunk DMA, then wait on all of them."""

    def kernel(x_hbm, o_hbm, sems):
        copies = []
        for k, (start, size) in enumerate(bounds):
            cp = pltpu.make_async_copy(
                x_hbm.at[pl.ds(start, size)],
                o_hbm.at[pl.ds(start, size)],
                sems.at[k],
            )
            cp.start()
            copies.append(cp)
        for cp in copies:
            cp.wait()

    return kernel


def identity_pallas(x: jnp.ndarray) -> jnp.ndarray:
    """Identity forward via an explicit Pallas kernel (chunked HBM->HBM DMA copy)."""
    if x.size == 0:
        return x

    n = int(x.size)
    itemsize = max(1, jnp.dtype(x.dtype).itemsize)
    total_bytes = n * itemsize

    if n % _LANE == 0:
        # Lane-dense 2-D view: chunk along rows, starts aligned to 8 rows (>=4 KiB f32).
        flat = x.reshape(n // _LANE, _LANE)
        lead, align = n // _LANE, 8
    else:
        # Ragged total size: stay flat 1-D; DMA engines don't care about (8,128) in HBM.
        # TODO(synk): sub-byte dtypes (e.g. int4) with odd flat sizes are untested here.
        flat = x.reshape(n)
        lead, align = n, 1

    want_chunks = min(_MAX_DMA_CHUNKS, max(1, total_bytes // _MIN_CHUNK_BYTES))
    bounds = _chunk_bounds(lead, want_chunks, align)

    out = pl.pallas_call(
        _make_dma_copy_kernel(bounds),
        out_shape=jax.ShapeDtypeStruct(flat.shape, x.dtype),
        in_specs=[pl.BlockSpec(memory_space=pl.ANY)],
        out_specs=pl.BlockSpec(memory_space=pl.ANY),
        scratch_shapes=[pltpu.SemaphoreType.DMA((len(bounds),))],
        cost_estimate=pl.CostEstimate(
            flops=0, transcendentals=0, bytes_accessed=2 * total_bytes
        ),
    )(flat)
    return out.reshape(x.shape)


if __name__ == "__main__":
    key = jax.random.PRNGKey(0)
    # NCHW, consistent with typical PyTorch conv-net inputs: batch=2, ch=4, 16x16 spatial.
    x = jax.random.normal(key, (2, 4, 16, 16), dtype=jnp.float32)

    # Zero-cost path (the one real code should use):
    y_fast = identity(x)
    assert y_fast is x

    # Explicit Pallas kernel path:
    y = identity_pallas(x)
    jax.block_until_ready(y)

    assert y.shape == x.shape, f"shape mismatch: {y.shape} vs {x.shape}"
    assert y.dtype == x.dtype, f"dtype mismatch: {y.dtype} vs {x.dtype}"
    assert bool(jnp.array_equal(y, x)), "identity output differs from input"

    # Exercise the ragged (non-128-divisible) path too.
    x_odd = jax.random.normal(jax.random.PRNGKey(1), (3, 5, 7), dtype=jnp.float32)
    y_odd = identity_pallas(x_odd)
    jax.block_until_ready(y_odd)
    assert bool(jnp.array_equal(y_odd, x_odd)), "ragged identity output differs"

    print("KERNEL_OK")
</pallas_src>

<mosaic_0001>
module attributes {stable_mosaic.version = 11 : i64} {
  func.func @kernel(%arg0: memref<16x128xf32, #tpu.memory_space<any>>, %arg1: memref<16x128xf32, #tpu.memory_space<any>>, %arg2: memref<1x!tpu.dma_semaphore, #tpu.memory_space<semaphore_mem>>) attributes {dimension_semantics = [], scalar_prefetch = 0 : i64, scratch_operands = 1 : i64, tpu.core_type = #tpu.core_type<tc>} {
    %c0_i32 = arith.constant 0 : i32
    %c0_i32_0 = arith.constant 0 : i32
    %c0_i32_1 = arith.constant 0 : i32
    %0 = tpu.memref_slice %arg0[%c0_i32_0, %c0_i32_1] : memref<16x128xf32, #tpu.memory_space<any>> -> memref<16x128xf32, #tpu.memory_space<any>>
    %c0_i32_2 = arith.constant 0 : i32
    %c0_i32_3 = arith.constant 0 : i32
    %1 = tpu.memref_slice %arg1[%c0_i32_2, %c0_i32_3] : memref<16x128xf32, #tpu.memory_space<any>> -> memref<16x128xf32, #tpu.memory_space<any>>
    %2 = tpu.memref_slice %arg2[%c0_i32] : memref<1x!tpu.dma_semaphore, #tpu.memory_space<semaphore_mem>> -> memref<1x!tpu.dma_semaphore, #tpu.memory_space<semaphore_mem>>
    %3 = tpu.memref_squeeze %2 : memref<1x!tpu.dma_semaphore, #tpu.memory_space<semaphore_mem>> -> memref<!tpu.dma_semaphore, #tpu.memory_space<semaphore_mem>>
    tpu.enqueue_dma source(%0 : memref<16x128xf32, #tpu.memory_space<any>>) target(%1 : memref<16x128xf32, #tpu.memory_space<any>>) target_semaphore(%3 : memref<!tpu.dma_semaphore, #tpu.memory_space<semaphore_mem>>)
    %c0_i32_4 = arith.constant 0 : i32
    %c0_i32_5 = arith.constant 0 : i32
    %c0_i32_6 = arith.constant 0 : i32
    %4 = tpu.memref_slice %arg0[%c0_i32_5, %c0_i32_6] : memref<16x128xf32, #tpu.memory_space<any>> -> memref<16x128xf32, #tpu.memory_space<any>>
    %c0_i32_7 = arith.constant 0 : i32
    %c0_i32_8 = arith.constant 0 : i32
    %5 = tpu.memref_slice %arg1[%c0_i32_7, %c0_i32_8] : memref<16x128xf32, #tpu.memory_space<any>> -> memref<16x128xf32, #tpu.memory_space<any>>
    %6 = tpu.memref_slice %arg2[%c0_i32_4] : memref<1x!tpu.dma_semaphore, #tpu.memory_space<semaphore_mem>> -> memref<1x!tpu.dma_semaphore, #tpu.memory_space<semaphore_mem>>
    %7 = tpu.memref_squeeze %6 : memref<1x!tpu.dma_semaphore, #tpu.memory_space<semaphore_mem>> -> memref<!tpu.dma_semaphore, #tpu.memory_space<semaphore_mem>>
    tpu.wait_dma2 semaphore(%7 : memref<!tpu.dma_semaphore, #tpu.memory_space<semaphore_mem>>) src(%4 : memref<16x128xf32, #tpu.memory_space<any>>) dst(%5 : memref<16x128xf32, #tpu.memory_space<any>>)
    return
  }
}

</mosaic_0001>

<bundles_post_ra>
// kernel: tpu_custom_call.1
= control target key start
LH: loop header
LB: loop body
LE: loop exit
PB: predicated region body
PF: predicated region fallthrough
CT: control target
= control target key end

     0   :  { %s34_s6 = smov [#allocation2]   ;;  %s35_s7 = smov [#allocation3]   ;;  %s53_s0 = inlined_call_operand.hbm [shape: f32[16,128], index: 0, kind: input, shape index: {}]   ;;  %s54_s1 = inlined_call_operand.hbm [shape: f32[16,128], index: 1, kind: output, shape index: {}]  }
   0x1   :  { %s36_s8 = smov 0  }
   0x2   :  { %18 = dma.general %s53_s0, 256, %s54_s1, %s34_s6, %s35_s7, [#allocation4], %s36_s8, 0  }
   0x3   :  { %32 = dma.done.wait [#allocation2], 256 }
   0x4   :  { %33 = vsyncadd [#allocation2], 4294967040 }
   0x5   :  { %22 = vsyncmov [#allocation2] }
   0x8   :  { %s23_s13 = vpop.sfrf %22 }
   0x9   :  { %p28_p0 = scmp.ne.s32.totalorder %s23_s13, 0 }
   0xb   :  { %27 = shalt.err (%p28_p0)  }

</bundles_post_ra>
